<compile_context>
chip_gen: v7x
topology: tpu7x:2x2x1
jax: 0.10.0
libtpu: 0.0.40
codegen_flags: <defaults>
</compile_context>

<pallas_src>
import functools

import jax
import jax.numpy as jnp
from jax.experimental import pallas as pl
from jax.experimental.pallas import tpu as pltpu

HIDDEN_SIZE = 16
NUMBER_HIDDEN_LAYERS = 2  # -> exactly two hidden Linear layers as in the torch module


def _round_up(x: int, m: int) -> int:
    return ((x + m - 1) // m) * m


def _mlp_kernel(x_ref, w1_ref, b1_ref, w2_ref, b2_ref, w3_ref, b3_ref, o_ref,
                *, compute_dtype):
    """Fused 3-layer MLP forward for one (lane-packed) batch tile.

    Every ref holds P batch rows packed side-by-side along lanes; the weights
    are block-diagonal so each packed row is processed independently.  Matmul
    operands are `compute_dtype` (bf16 by default) with f32 MXU accumulation;
    bias-add and ReLU stay f32 on the VPU.
    """
    x = x_ref[...]  # already compute_dtype from the wrapper

    # Layer 1: Linear(input_size, HIDDEN_SIZE) + ReLU       (packed width 128)
    h = jnp.dot(x, w1_ref[...], preferred_element_type=jnp.float32) + b1_ref[...]
    h = jnp.maximum(h, 0.0)

    # Layer 2: Linear(HIDDEN_SIZE, HIDDEN_SIZE) + ReLU      (packed width 128)
    h = jnp.dot(h.astype(compute_dtype), w2_ref[...],
                preferred_element_type=jnp.float32) + b2_ref[...]
    h = jnp.maximum(h, 0.0)

    # Layer 3: Linear(HIDDEN_SIZE, output_size), no activation. Output block is
    # the full (unpadded) packed width -> no HBM write amplification.
    o_ref[...] = (
        jnp.dot(h.astype(compute_dtype), w3_ref[...],
                preferred_element_type=jnp.float32) + b3_ref[...]
    ).astype(o_ref.dtype)


@functools.partial(jax.jit,
                   static_argnames=("compute_dtype", "out_dtype", "block_batch"))
def mlp_forward(x, w1, b1, w2, b2, w3, b3, *,
                compute_dtype=jnp.bfloat16, out_dtype=None, block_batch=8192):
    if out_dtype is None:
        out_dtype = compute_dtype  # bf16 output by default (halves writeback bytes)

    batch, in_size = x.shape
    hidden = w1.shape[1]
    out_size = w3.shape[1]

    # --- Lane-packing factor: P rows per packed row so hidden width = 128.
    P = 128 // hidden if (hidden <= 128 and 128 % hidden == 0) else 1

    # --- Batch tile (in original rows): multiple of 8 packed sublanes.
    tile_q = 8 * P
    block_batch = max(tile_q, _round_up(block_batch, tile_q))
    if batch <= tile_q:
        tm = tile_q
    elif batch <= 2 * block_batch:
        # At least two grid tiles so the "parallel" batch axis can shard
        # across both v7x TensorCores (harmless on single-TC v5e/v6e).
        tm = _round_up((batch + 1) // 2, tile_q)
    else:
        tm = block_batch
    batch_pad = _round_up(batch, tm)

    # --- Pad ragged batch, cast operands, pack rows into lanes (free reshape).
    xp = x.astype(compute_dtype)
    if batch_pad != batch:
        xp = jnp.zeros((batch_pad, in_size), compute_dtype).at[:batch].set(xp)
    xp = xp.reshape(batch_pad // P, P * in_size)  # contiguous -> zero-cost

    # --- Block-diagonal weights: each of the P packed rows gets its own copy
    #     of W on the diagonal; biases are tiled P times. All tiny, VMEM-resident.
    eye = jnp.eye(P, dtype=jnp.float32)
    w1p = jnp.kron(eye, w1).astype(compute_dtype)   # (P*in,  P*hidden)
    w2p = jnp.kron(eye, w2).astype(compute_dtype)   # (P*hid, P*hidden)
    w3p = jnp.kron(eye, w3).astype(compute_dtype)   # (P*hid, P*out)
    b1p = jnp.tile(b1, (1, P))                      # f32 (v5e VPU has no bf16)
    b2p = jnp.tile(b2, (1, P))
    b3p = jnp.tile(b3, (1, P))

    rows = batch_pad // P        # packed rows total
    tr = tm // P                 # packed rows per grid step (multiple of 8)
    grid = (rows // tr,)

    x_spec = pl.BlockSpec((tr, P * in_size), lambda i: (i, 0))
    out_spec = pl.BlockSpec((tr, P * out_size), lambda i: (i, 0))
    # Weights/biases: constant index_map -> fetched once, stay VMEM-resident.
    resident = lambda arr: pl.BlockSpec(arr.shape, lambda i: (0, 0))

    out_packed = pl.pallas_call(
        functools.partial(_mlp_kernel, compute_dtype=compute_dtype),
        out_shape=jax.ShapeDtypeStruct((rows, P * out_size), out_dtype),
        grid=grid,
        in_specs=[
            x_spec,
            resident(w1p), resident(b1p),
            resident(w2p), resident(b2p),
            resident(w3p), resident(b3p),
        ],
        out_specs=out_spec,
        compiler_params=pltpu.CompilerParams(
            # Per-step VMEM is ~1.5 MiB even at block_batch=8192, far under the
            # scoped default on v5e/v6e/v7x, so no vmem_limit_bytes needed.
            dimension_semantics=("parallel",),
        ),
    )(xp, w1p, b1p, w2p, b2p, w3p, b3p)

    # Undo lane packing (free contiguous reshape) and strip batch padding.
    return out_packed.reshape(batch_pad, out_size)[:batch]


def init_mlp_params(key, input_size, output_size):
    """Deterministic init mirroring torch.nn.Linear default (U(-1/sqrt(fan_in), +))."""
    dims = [input_size, HIDDEN_SIZE, HIDDEN_SIZE, output_size]
    params = []
    for i in range(3):
        fan_in, fan_out = dims[i], dims[i + 1]
        key, kw, kb = jax.random.split(key, 3)
        bound = 1.0 / (fan_in ** 0.5)
        w = jax.random.uniform(kw, (fan_in, fan_out), jnp.float32, -bound, bound)
        b = jax.random.uniform(kb, (1, fan_out), jnp.float32, -bound, bound)
        params.extend([w, b])
    return params


def mlp_reference(x, w1, b1, w2, b2, w3, b3):
    h = jnp.maximum(x @ w1 + b1, 0.0)
    h = jnp.maximum(h @ w2 + b2, 0.0)
    return h @ w3 + b3


if __name__ == "__main__":
    key = jax.random.PRNGKey(0)

    # Small shapes consistent with the module: MLP(input_size=32, output_size=4).
    batch = 8
    input_size = 32
    output_size = 4

    key, kx, kx2 = jax.random.split(key, 3)
    x = jax.random.normal(kx, (batch, input_size), jnp.float32)
    params = init_mlp_params(key, input_size, output_size)

    ref = mlp_reference(x, *params)

    # f32 operand path (goes through the MXU, so tolerance-checked, not bitwise).
    out_f32 = mlp_forward(x, *params, compute_dtype=jnp.float32)
    jax.block_until_ready(out_f32)
    assert out_f32.shape == (batch, output_size)
    assert jnp.allclose(out_f32, ref, atol=1e-5, rtol=1e-5), "f32 mismatch vs reference"

    # Default path: bf16 operands + bf16 output (memory-roofline choice).
    out_bf16 = mlp_forward(x, *params)
    jax.block_until_ready(out_bf16)
    assert out_bf16.shape == (batch, output_size)
    assert jnp.allclose(out_bf16.astype(jnp.float32), ref, atol=5e-2, rtol=5e-2), \
        "bf16 mismatch vs reference"

    # Larger ragged batch: exercises multi-tile grid, >=2-tile megacore split,
    # batch padding, and the packed-output unpacking path.
    big_batch = 2000  # not a multiple of the packed tile
    xb = jax.random.normal(kx2, (big_batch, input_size), jnp.float32)
    out_big = mlp_forward(xb, *params, compute_dtype=jnp.float32)
    jax.block_until_ready(out_big)
    assert out_big.shape == (big_batch, output_size)
    assert jnp.allclose(out_big, mlp_reference(xb, *params), atol=1e-5, rtol=1e-5), \
        "tiled/ragged mismatch vs reference"

    print("KERNEL_OK")
</pallas_src>

<mosaic_0001>
module attributes {stable_mosaic.version = 11 : i64} {
  func.func @_mlp_kernel(%arg0: i32, %arg1: memref<8x256xf32, #tpu.memory_space<vmem>>, %arg2: memref<256x128xf32, #tpu.memory_space<vmem>>, %arg3: memref<1x128xf32, #tpu.memory_space<vmem>>, %arg4: memref<128x128xf32, #tpu.memory_space<vmem>>, %arg5: memref<1x128xf32, #tpu.memory_space<vmem>>, %arg6: memref<128x32xf32, #tpu.memory_space<vmem>>, %arg7: memref<1x32xf32, #tpu.memory_space<vmem>>, %arg8: memref<8x32xf32, #tpu.memory_space<vmem>>) attributes {dimension_semantics = [#tpu.dimension_semantics<parallel>], iteration_bounds = array<i64: 1>, scalar_prefetch = 0 : i64, scratch_operands = 0 : i64, tpu.core_type = #tpu.core_type<tc>, window_params = [{transform_indices = @transform_0, window_bounds = array<i64: 8, 256>}, {pipeline_mode = #tpu.pipeline_mode<synchronous>, transform_indices = @transform_1, window_bounds = array<i64: 256, 128>}, {pipeline_mode = #tpu.pipeline_mode<synchronous>, transform_indices = @transform_2, window_bounds = array<i64: 1, 128>}, {pipeline_mode = #tpu.pipeline_mode<synchronous>, transform_indices = @transform_3, window_bounds = array<i64: 128, 128>}, {pipeline_mode = #tpu.pipeline_mode<synchronous>, transform_indices = @transform_4, window_bounds = array<i64: 1, 128>}, {pipeline_mode = #tpu.pipeline_mode<synchronous>, transform_indices = @transform_5, window_bounds = array<i64: 128, 32>}, {pipeline_mode = #tpu.pipeline_mode<synchronous>, transform_indices = @transform_6, window_bounds = array<i64: 1, 32>}, {transform_indices = @transform_7, window_bounds = array<i64: 8, 32>}]} {
    %c0 = arith.constant 0 : index
    %c0_0 = arith.constant 0 : index
    %0 = vector.load %arg1[%c0, %c0_0] : memref<8x256xf32, #tpu.memory_space<vmem>>, vector<8x256xf32>
    %c0_1 = arith.constant 0 : index
    %c0_2 = arith.constant 0 : index
    %1 = vector.load %arg2[%c0_1, %c0_2] : memref<256x128xf32, #tpu.memory_space<vmem>>, vector<256x128xf32>
    %cst = arith.constant dense<0.000000e+00> : vector<8x128xf32>
    %2 = tpu.matmul %0, %1, %cst {dimension_numbers = #tpu.dot_dimension_numbers<[1], [0], [0], [1], [0, 0, 1, 1], [], []>} : vector<8x256xf32>, vector<256x128xf32>, vector<8x128xf32> -> vector<8x128xf32>
    %c0_3 = arith.constant 0 : index
    %c0_4 = arith.constant 0 : index
    %3 = vector.load %arg3[%c0_3, %c0_4] : memref<1x128xf32, #tpu.memory_space<vmem>>, vector<1x128xf32>
    %4 = vector.broadcast %3 : vector<1x128xf32> to vector<8x128xf32>
    %5 = arith.addf %2, %4 : vector<8x128xf32>
    %cst_5 = arith.constant 0.000000e+00 : f32
    %6 = vector.broadcast %cst_5 : f32 to vector<8x128xf32>
    %7 = arith.maximumf %5, %6 : vector<8x128xf32>
    %c0_6 = arith.constant 0 : index
    %c0_7 = arith.constant 0 : index
    %8 = vector.load %arg4[%c0_6, %c0_7] : memref<128x128xf32, #tpu.memory_space<vmem>>, vector<128x128xf32>
    %cst_8 = arith.constant dense<0.000000e+00> : vector<8x128xf32>
    %9 = tpu.matmul %7, %8, %cst_8 {dimension_numbers = #tpu.dot_dimension_numbers<[1], [0], [0], [1], [0, 0, 1, 1], [], []>} : vector<8x128xf32>, vector<128x128xf32>, vector<8x128xf32> -> vector<8x128xf32>
    %c0_9 = arith.constant 0 : index
    %c0_10 = arith.constant 0 : index
    %10 = vector.load %arg5[%c0_9, %c0_10] : memref<1x128xf32, #tpu.memory_space<vmem>>, vector<1x128xf32>
    %11 = vector.broadcast %10 : vector<1x128xf32> to vector<8x128xf32>
    %12 = arith.addf %9, %11 : vector<8x128xf32>
    %cst_11 = arith.constant 0.000000e+00 : f32
    %13 = vector.broadcast %cst_11 : f32 to vector<8x128xf32>
    %14 = arith.maximumf %12, %13 : vector<8x128xf32>
    %c0_12 = arith.constant 0 : index
    %c0_13 = arith.constant 0 : index
    %15 = vector.load %arg6[%c0_12, %c0_13] : memref<128x32xf32, #tpu.memory_space<vmem>>, vector<128x32xf32>
    %cst_14 = arith.constant dense<0.000000e+00> : vector<8x32xf32>
    %16 = tpu.matmul %14, %15, %cst_14 {dimension_numbers = #tpu.dot_dimension_numbers<[1], [0], [0], [1], [0, 0, 1, 1], [], []>} : vector<8x128xf32>, vector<128x32xf32>, vector<8x32xf32> -> vector<8x32xf32>
    %c0_15 = arith.constant 0 : index
    %c0_16 = arith.constant 0 : index
    %17 = vector.load %arg7[%c0_15, %c0_16] : memref<1x32xf32, #tpu.memory_space<vmem>>, vector<1x32xf32>
    %18 = vector.broadcast %17 : vector<1x32xf32> to vector<8x32xf32>
    %19 = arith.addf %16, %18 : vector<8x32xf32>
    %c0_17 = arith.constant 0 : index
    %c0_18 = arith.constant 0 : index
    %20 = vector.load %arg8[%c0_17, %c0_18] : memref<8x32xf32, #tpu.memory_space<vmem>>, vector<8x32xf32>
    tpu.vector_store %arg8[%c0_17, %c0_18], %19 {strides = array<i32>} : memref<8x32xf32, #tpu.memory_space<vmem>>, vector<8x32xf32>,
    return
  }
  func.func @transform_0(%arg0: i32) -> (i32, i32) {
    %c0_i32 = arith.constant 0 : i32
    %c0_i32_0 = arith.constant 0 : i32
    return %arg0, %c0_i32 : i32, i32
  }
  func.func @transform_1(%arg0: i32) -> (i32, i32) {
    %c0_i32 = arith.constant 0 : i32
    %c0_i32_0 = arith.constant 0 : i32
    %c0_i32_1 = arith.constant 0 : i32
    return %c0_i32, %c0_i32_0 : i32, i32
  }
  func.func @transform_2(%arg0: i32) -> (i32, i32) {
    %c0_i32 = arith.constant 0 : i32
    %c0_i32_0 = arith.constant 0 : i32
    %c0_i32_1 = arith.constant 0 : i32
    return %c0_i32, %c0_i32_0 : i32, i32
  }
  func.func @transform_3(%arg0: i32) -> (i32, i32) {
    %c0_i32 = arith.constant 0 : i32
    %c0_i32_0 = arith.constant 0 : i32
    %c0_i32_1 = arith.constant 0 : i32
    return %c0_i32, %c0_i32_0 : i32, i32
  }
  func.func @transform_4(%arg0: i32) -> (i32, i32) {
    %c0_i32 = arith.constant 0 : i32
    %c0_i32_0 = arith.constant 0 : i32
    %c0_i32_1 = arith.constant 0 : i32
    return %c0_i32, %c0_i32_0 : i32, i32
  }
  func.func @transform_5(%arg0: i32) -> (i32, i32) {
    %c0_i32 = arith.constant 0 : i32
    %c0_i32_0 = arith.constant 0 : i32
    %c0_i32_1 = arith.constant 0 : i32
    return %c0_i32, %c0_i32_0 : i32, i32
  }
  func.func @transform_6(%arg0: i32) -> (i32, i32) {
    %c0_i32 = arith.constant 0 : i32
    %c0_i32_0 = arith.constant 0 : i32
    %c0_i32_1 = arith.constant 0 : i32
    return %c0_i32, %c0_i32_0 : i32, i32
  }
  func.func @transform_7(%arg0: i32) -> (i32, i32) {
    %c0_i32 = arith.constant 0 : i32
    %c0_i32_0 = arith.constant 0 : i32
    return %arg0, %c0_i32 : i32, i32
  }
}

</mosaic_0001>

<bundles_post_ra>
// kernel: mlp_forward.1
= control target key start
LH: loop header
LB: loop body
LE: loop exit
PB: predicated region body
PF: predicated region fallthrough
CT: control target
= control target key end

     0   :  { %v556_v3 = vmov 0.0|0.0   ;;  %vm557_vm0 = vmmov 0   ;;  %vm325_vm1 = vcmask 261120   ;;  %s825_s1 = inlined_call_operand.vmem [shape: f32[256,128], index: 1, kind: input, shape index: {}]   ;;  %s826_s0 = inlined_call_operand.vmem [shape: f32[8,256], index: 0, kind: input, shape index: {}]   ;;  %s827_s3 = inlined_call_operand.vmem [shape: f32[128,128], index: 3, kind: input, shape index: {}]   ;;  %s828_s5 = inlined_call_operand.vmem [shape: f32[128,32], index: 5, kind: input, shape index: {}]   ;;  %s829_s2 = inlined_call_operand.vmem [shape: f32[1,128], index: 2, kind: input, shape index: {}]   ;;  %s830_s4 = inlined_call_operand.vmem [shape: f32[1,128], index: 4, kind: input, shape index: {}]   ;;  %s831_s6 = inlined_call_operand.vmem [shape: f32[1,32], index: 6, kind: input, shape index: {}]   ;;  %s832_s7 = inlined_call_operand.vmem [shape: f32[8,32], index: 7, kind: output, shape index: {}]  }
   0x1   :  { %v44_v0 = vld [vmem:[%s825_s1 + $0x80] sm:$0xff]  ;;  %v45_v1 = vld [vmem:[%s825_s1 + $0x88] sm:$0xff]  ;;  %505 = vmatprep.subr.bf16.mxu1 %v556_v3  ;;  %v46_v6 = vld [vmem:[%s825_s1 + $0x90] sm:$0xff] }
   0x2   :  { %v28_v2 = vld [vmem:[%s825_s1] sm:$0xff]  ;;  %v473_v4 = vpack.c.bf16 %v45_v1, %v44_v0  ;;  %v29_v5 = vld [vmem:[%s825_s1 + $0x8] sm:$0xff]  ;;  %v47_v7 = vld [vmem:[%s825_s1 + $0x98] sm:$0xff] }
   0x3   :  { %v475_v8 = vpack.c.bf16 %v29_v5, %v28_v2  ;;  %v477_v9 = vpack.c.bf16 %v47_v7, %v46_v6  ;;  %v30_v10 = vld [vmem:[%s825_s1 + $0x10] sm:$0xff]  ;;  %v31_v11 = vld [vmem:[%s825_s1 + $0x18] sm:$0xff]  ;;  %v48_v12 = vld [vmem:[%s825_s1 + $0xa0] sm:$0xff] }
   0x4   :  { %474 = vmatprep.subr.bf16.mxu0 %v473_v4  ;;  %v49_v13 = vld [vmem:[%s825_s1 + $0xa8] sm:$0xff]  ;;  %v479_v14 = vpack.c.bf16 %v31_v11, %v30_v10  ;;  %v32_v16 = vld [vmem:[%s825_s1 + $0x20] sm:$0xff]  ;;  %v50_v18 = vld [vmem:[%s825_s1 + $0xb0] sm:$0xff] }
   0x5   :  { %476 = vmatpush3.bf16.msra.mxu0 %v475_v8  ;;  %v481_v15 = vpack.c.bf16 %v49_v13, %v48_v12  ;;  %v33_v17 = vld [vmem:[%s825_s1 + $0x28] sm:$0xff]  ;;  %v51_v19 = vld [vmem:[%s825_s1 + $0xb8] sm:$0xff]  ;;  %v34_v22 = vld [vmem:[%s825_s1 + $0x30] sm:$0xff]  ;;  %v558_v12 = vmov 0.0  }
   0x6   :  { %478 = vmatprep.subr.bf16.mxu0 %v477_v9  ;;  %v483_v20 = vpack.c.bf16 %v33_v17, %v32_v16  ;;  %v485_v21 = vpack.c.bf16 %v51_v19, %v50_v18  ;;  %v35_v23 = vld [vmem:[%s825_s1 + $0x38] sm:$0xff]  ;;  %v52_v24 = vld [vmem:[%s825_s1 + $0xc0] sm:$0xff]  ;;  %v53_v25 = vld [vmem:[%s825_s1 + $0xc8] sm:$0xff]  ;;  %435 = vmatprep.mubr.msk.f32.mxu1 %vm557_vm0, %v558_v12 }
   0x7   :  { %v27_v26 = vld [vmem:[%s826_s0 + $0x8] sm:$0xff]  ;;  %v138_v27 = vld [vmem:[%s827_s3] sm:$0xff]  ;;  %v487_v29 = vpack.c.bf16 %v35_v23, %v34_v22  ;;  %v140_v31 = vld [vmem:[%s827_s3 + $0x10] sm:$0xff]  ;;  %v489_v33 = vpack.c.bf16 %v53_v25, %v52_v24 }
   0x8   :  { %131 = vmatprep.mubr.f32.mxu0 %v27_v26  ;;  %v139_v28 = vld [vmem:[%s827_s3 + $0x8] sm:$0xff]  ;;  %v141_v32 = vld [vmem:[%s827_s3 + $0x18] sm:$0xff]  ;;  %v36_v34 = vld [vmem:[%s825_s1 + $0x40] sm:$0xff] }
   0x9   :  { %480 = vmatpush3.bf16.msra.mxu0 %v479_v14  ;;  %v506_v30 = vpack.c.bf16 %v139_v28, %v138_v27  ;;  %v37_v35 = vld [vmem:[%s825_s1 + $0x48] sm:$0xff]  ;;  %v54_v36 = vld [vmem:[%s825_s1 + $0xd0] sm:$0xff]  ;;  %v55_v37 = vld [vmem:[%s825_s1 + $0xd8] sm:$0xff]  ;;  %v509_v38 = vpack.c.bf16 %v141_v32, %v140_v31 }
   0xa   :  { %482 = vmatprep.subr.bf16.mxu0 %v481_v15  ;;  %v142_v39 = vld [vmem:[%s827_s3 + $0x20] sm:$0xff]  ;;  %v143_v40 = vld [vmem:[%s827_s3 + $0x28] sm:$0xff]  ;;  %v491_v41 = vpack.c.bf16 %v37_v35, %v36_v34  ;;  %v493_v42 = vpack.c.bf16 %v55_v37, %v54_v36  ;;  %v38_v43 = vld [vmem:[%s825_s1 + $0x50] sm:$0xff] }
   0xb   :  { %507 = vmatpush3.bf16.msra.mxu1 %v506_v30  ;;  %v39_v44 = vld [vmem:[%s825_s1 + $0x58] sm:$0xff]  ;;  %v56_v45 = vld [vmem:[%s825_s1 + $0xe0] sm:$0xff]  ;;  %v57_v46 = vld [vmem:[%s825_s1 + $0xe8] sm:$0xff]  ;;  %v512_v47 = vpack.c.bf16 %v143_v40, %v142_v39 }
   0xc   :  { %508 = vmatprep.subr.bf16.mxu1 %v556_v3  ;;  %v144_v48 = vld [vmem:[%s827_s3 + $0x30] sm:$0xff]  ;;  %v145_v49 = vld [vmem:[%s827_s3 + $0x38] sm:$0xff]  ;;  %v495_v50 = vpack.c.bf16 %v39_v44, %v38_v43  ;;  %v497_v51 = vpack.c.bf16 %v57_v46, %v56_v45  ;;  %v40_v52 = vld [vmem:[%s825_s1 + $0x60] sm:$0xff] }
   0xd   :  { %484 = vmatpush3.bf16.msra.mxu0 %v483_v20  ;;  %v41_v53 = vld [vmem:[%s825_s1 + $0x68] sm:$0xff]  ;;  %v58_v54 = vld [vmem:[%s825_s1 + $0xf0] sm:$0xff]  ;;  %v59_v55 = vld [vmem:[%s825_s1 + $0xf8] sm:$0xff]  ;;  %v515_v56 = vpack.c.bf16 %v145_v49, %v144_v48 }
   0xe   :  { %486 = vmatprep.subr.bf16.mxu0 %v485_v21  ;;  %v146_v57 = vld [vmem:[%s827_s3 + $0x40] sm:$0xff]  ;;  %v147_v58 = vld [vmem:[%s827_s3 + $0x48] sm:$0xff]  ;;  %v499_v59 = vpack.c.bf16 %v41_v53, %v40_v52  ;;  %v501_v60 = vpack.c.bf16 %v59_v55, %v58_v54  ;;  %v42_v61 = vld [vmem:[%s825_s1 + $0x70] sm:$0xff] }
   0xf   :  { %510 = vmatpush3.bf16.msra.mxu1 %v509_v38  ;;  %v43_v62 = vld [vmem:[%s825_s1 + $0x78] sm:$0xff]  ;;  %v518_v63 = vpack.c.bf16 %v147_v58, %v146_v57  ;;  %v148_v0 = vld [vmem:[%s827_s3 + $0x50] sm:$0xff]  ;;  %v26_v5 = vld [vmem:[%s826_s0] sm:$0xff] }
  0x10   :  { %511 = vmatprep.subr.bf16.mxu1 %v556_v3  ;;  %v149_v1 = vld [vmem:[%s827_s3 + $0x58] sm:$0xff]  ;;  %v503_v2 = vpack.c.bf16 %v43_v62, %v42_v61  ;;  %v150_v6 = vld [vmem:[%s827_s3 + $0x60] sm:$0xff]  ;;  %v151_v7 = vld [vmem:[%s827_s3 + $0x68] sm:$0xff] }
  0x11   :  { %488 = vmatpush3.bf16.msra.mxu0 %v487_v29  ;;  %v521_v4 = vpack.c.bf16 %v149_v1, %v148_v0  ;;  %v524_v8 = vpack.c.bf16 %v151_v7, %v150_v6  ;;  %v152_v9 = vld [vmem:[%s827_s3 + $0x70] sm:$0xff]  ;;  %v153_v10 = vld [vmem:[%s827_s3 + $0x78] sm:$0xff]  ;;  %v232_v13 = vld [vmem:[%s828_s5] sm:$0xff] }
  0x12   :  { %490 = vmatprep.subr.bf16.mxu0 %v489_v33  ;;  %v527_v11 = vpack.c.bf16 %v153_v10, %v152_v9  ;;  %v233_v14 = vld [vmem:[%s828_s5 + $0x8] sm:$0xff]  ;;  %v234_v15 = vld [vmem:[%s828_s5 + $0x10] sm:$0xff]  ;;  %v235_v17 = vld [vmem:[%s828_s5 + $0x18] sm:$0xff] }
  0x13   :  { %513 = vmatpush3.bf16.msra.mxu1 %v512_v47  ;;  %v530_v16 = vpack.c.bf16 %v233_v14, %v232_v13  ;;  %v533_v18 = vpack.c.bf16 %v235_v17, %v234_v15  ;;  %v236_v19 = vld [vmem:[%s828_s5 + $0x20] sm:$0xff]  ;;  %v237_v20 = vld [vmem:[%s828_s5 + $0x28] sm:$0xff]  ;;  %v238_v22 = vld [vmem:[%s828_s5 + $0x30] sm:$0xff] }
  0x14   :  { %514 = vmatprep.subr.bf16.mxu1 %v556_v3  ;;  %v536_v21 = vpack.c.bf16 %v237_v20, %v236_v19  ;;  %v239_v23 = vld [vmem:[%s828_s5 + $0x38] sm:$0xff]  ;;  %v240_v25 = vld [vmem:[%s828_s5 + $0x40] sm:$0xff]  ;;  %v241_v26 = vld [vmem:[%s828_s5 + $0x48] sm:$0xff] }
  0x15   :  { %492 = vmatpush3.bf16.msra.mxu0 %v491_v41  ;;  %v539_v24 = vpack.c.bf16 %v239_v23, %v238_v22  ;;  %v542_v27 = vpack.c.bf16 %v241_v26, %v240_v25  ;;  %v242_v28 = vld [vmem:[%s828_s5 + $0x50] sm:$0xff]  ;;  %v243_v29 = vld [vmem:[%s828_s5 + $0x58] sm:$0xff]  ;;  %v244_v31 = vld [vmem:[%s828_s5 + $0x60] sm:$0xff] }
  0x16   :  { %494 = vmatprep.subr.bf16.mxu0 %v493_v42  ;;  %v545_v30 = vpack.c.bf16 %v243_v29, %v242_v28  ;;  %v245_v32 = vld [vmem:[%s828_s5 + $0x68] sm:$0xff]  ;;  %v331_v35 = vld [vmem:[%s829_s2] ss:$0 sm:$0xff]  ;;  %v246_v40 = vld [vmem:[%s828_s5 + $0x70] sm:$0xff] }
  0x17   :  { %516 = vmatpush3.bf16.msra.mxu1 %v515_v56  ;;  %v548_v33 = vpack.c.bf16 %v245_v32, %v244_v31  ;;  %v247_v41 = vld [vmem:[%s828_s5 + $0x78] sm:$0xff]  ;;  %v333_v47 = vld [vmem:[%s831_s6] ss:$0 sm:$0xff] }
  0x18   :  { %517 = vmatprep.subr.bf16.mxu1 %v556_v3  ;;  %v551_v42 = vpack.c.bf16 %v247_v41, %v246_v40 }
  0x19   :  { %496 = vmatpush3.bf16.msra.mxu0 %v495_v50 }
  0x1a   :  { %498 = vmatprep.subr.bf16.mxu0 %v497_v51 }
  0x1b   :  { %519 = vmatpush3.bf16.msra.mxu1 %v518_v63 }
  0x1c   :  { %520 = vmatprep.subr.bf16.mxu1 %v556_v3 }
  0x1d   :  { %500 = vmatpush3.bf16.msra.mxu0 %v499_v59 }
  0x1e   :  { %502 = vmatprep.subr.bf16.mxu0 %v501_v60 }
  0x1f   :  { %522 = vmatpush3.bf16.msra.mxu1 %v521_v4 }
  0x20   :  { %523 = vmatprep.subr.bf16.mxu1 %v556_v3 }
  0x21   :  { %504 = vmatpush3.bf16.msra.mxu0 %v503_v2 }
  0x22   :  { %529 = vmatprep.subr.bf16.mxu0 %v556_v3 }
  0x23   :  { %525 = vmatpush3.bf16.msra.mxu1 %v524_v8 }
  0x24   :  { %132 = vmatmul.mubr.f32.vlgmr.msra.gmra.mrb[0].mxu0 %v26_v5  ;;  %526 = vmatprep.subr.bf16.mxu1 %v556_v3 }
  0x25   :  { %470 = vmatprep.mubr.msk.f32.mxu0 %vm557_vm0, %v558_v12  ;;  %531 = vmatpush3.bf16.msra.mxu0 %v530_v16 }
  0x26   :  { %532 = vmatprep.subr.bf16.mxu0 %v556_v3 }
  0x27   :  { %528 = vmatpush3.bf16.msra.mxu1 %v527_v11 }
  0x29   :  { %534 = vmatpush3.bf16.msra.mxu0 %v533_v18 }
  0x2a   :  { %535 = vmatprep.subr.bf16.mxu0 %v556_v3 }
  0x2d   :  { %537 = vmatpush3.bf16.msra.mxu0 %v536_v21 }
  0x2e   :  { %538 = vmatprep.subr.bf16.mxu0 %v556_v3 }
  0x31   :  { %540 = vmatpush3.bf16.msra.mxu0 %v539_v24 }
  0x32   :  { %541 = vmatprep.subr.bf16.mxu0 %v556_v3 }
  0x35   :  { %543 = vmatpush3.bf16.msra.mxu0 %v542_v27 }
  0x36   :  { %544 = vmatprep.subr.bf16.mxu0 %v556_v3 }
  0x39   :  { %546 = vmatpush3.bf16.msra.mxu0 %v545_v30 }
  0x3a   :  { %547 = vmatprep.subr.bf16.mxu0 %v556_v3 }
  0x3d   :  { %549 = vmatpush3.bf16.msra.mxu0 %v548_v33 }
  0x3e   :  { %550 = vmatprep.subr.bf16.mxu0 %v556_v3  ;;  %v332_v3 = vld [vmem:[%s830_s4] ss:$0 sm:$0xff] }
  0x41   :  { %552 = vmatpush3.bf16.msra.mxu0 %v551_v42 }
  0xf7   :  { %v366_v34 = vpop.f32.mrb[0].mxu0 }
  0xf8   :  { %v367_v36 = vpop.f32.mrb[1].mxu0 }
  0xf9   :  { %v368_v37 = vadd.f32 %v367_v36, %v366_v34 }
  0xfb   :  { %v134_v38 = vadd.f32 %v368_v37, %v331_v35 }
  0xfd   :  { %v137_v39 = vmax.f32 %v134_v38, 0.0 }
  0xff   :  { %436 = vmatmul.mubr.f32.vlgmr.msra.gmra.mrb[0].mxu1 %v137_v39 }
 0x1d2   :  { %v227_v43 = vpop.f32.mrb[0].mxu1 }
 0x1d3   :  { %v228_v44 = vadd.f32 %v332_v3, %v227_v43  ;;  %v437_v45 = vpop.f32.mrb[1].mxu1 }
 0x1d5   :  { %v231_v46 = vmax.f32 %v228_v44, 0.0 }
 0x1d7   :  { %471 = vmatmul.mubr.f32.vlgmr.msra.gmra.mrb[2].mxu0 %v231_v46 }
 0x2aa   :  { %v321_v48 = vpop.f32.mrb[2].mxu0 }
 0x2ab   :  { %v322_v49 = vadd.f32 %v333_v47, %v321_v48  ;;  %v472_v50 = vpop.f32.mrb[3].mxu0 }
 0x2ad   :  { %326 = vst.msk [vmem:[%s832_s7] sm:$0xff] %vm325_vm1, %v322_v49 }

</bundles_post_ra>
